<compile_context>
chip_gen: v6e
topology: v6e:2x2x1
jax: 0.10.0
libtpu: 0.0.40
codegen_flags: <defaults>
</compile_context>

<pallas_src>
import functools

import jax
import jax.numpy as jnp
import numpy as np
from jax.experimental import pallas as pl
from jax.experimental.pallas import tpu as pltpu

BN_EPS = 1e-5
LN_EPS = 1e-5


# ------------------------------ Fused kernel ---------------------------------------
def _fused_kernel(seg_ref, tlo_ref, thi_ref,          # SMEM scalar prefetch
                  x_ref,                               # (TN, F) f32 node-feature tile
                  inv_cnt_ref,                         # (BT, 1) f32  1 / max(nodes_per_graph, 1)
                  scale_ref, shift_ref,                # (3, F) folded BN (rows: max, mean, sum)
                  g1_ref, b1_ref,                      # (1, F) LayerNorm bf1
                  w11_ref, bias11_ref,                 # (F, H) bf16, (1, H) f32
                  w12_ref, bias12_ref,                 # (H, F) bf16, (1, F) f32
                  g2_ref, b2_ref,                      # (1, F) LayerNorm bf11
                  out_ref,                             # (1, 3*BT, F) block of (GB, 3*BT, F)
                  acc_sum_ref, acc_max_ref,            # (BT, F) f32 scratch accumulators
                  *, BT, TN):
    gb = pl.program_id(0)             # graph block  ("parallel" -> megacore on v7x)
    t = pl.program_id(1)              # node tile    ("arbitrary" reduction axis)
    n_tiles = pl.num_programs(1)

    # ---- init accumulators at the first node tile of this graph block --------------
    @pl.when(t == 0)
    def _():
        acc_sum_ref[...] = jnp.zeros_like(acc_sum_ref)
        acc_max_ref[...] = jnp.full_like(acc_max_ref, -jnp.inf)

    # ---- accumulate sum / max for the graphs that overlap this node tile -----------
    x = x_ref[...]                                                         # (TN, F)
    base = t * TN
    row_ids = base + jax.lax.broadcasted_iota(jnp.int32, (TN, 1), 0)       # global node ids

    g_first = gb * BT
    g_begin = jnp.maximum(tlo_ref[t], g_first)               # first graph in (tile ∩ block)
    g_end = jnp.minimum(thi_ref[t], g_first + BT - 1)        # last  graph in (tile ∩ block)

    def body(g, carry):
        lo = seg_ref[g]
        hi = seg_ref[g + 1]
        in_seg = (row_ids >= lo) & (row_ids < hi)                          # (TN, 1)
        part_sum = jnp.sum(jnp.where(in_seg, x, 0.0), axis=0, keepdims=True)       # (1, F)
        part_max = jnp.max(jnp.where(in_seg, x, -jnp.inf), axis=0, keepdims=True)  # (1, F)
        r = g - g_first
        acc_sum_ref[pl.ds(r, 1), :] += part_sum
        acc_max_ref[pl.ds(r, 1), :] = jnp.maximum(acc_max_ref[pl.ds(r, 1), :], part_max)
        return carry

    jax.lax.fori_loop(g_begin, g_end + 1, body, 0)       # zero iterations if no overlap

    # ---- finalize: BN -> LN -> MLP -> residual -> LN on all BT graphs at once ------
    @pl.when(t == n_tiles - 1)
    def _():
        s = acc_sum_ref[...]                                               # (BT, F)
        mx = acc_max_ref[...]
        mx = jnp.where(mx == -jnp.inf, 0.0, mx)            # empty / padded graph guard
        mean = s * inv_cnt_ref[...]                                        # (BT, F)

        sc = scale_ref[...]
        sh = shift_ref[...]
        # eval-mode BatchNorm1d folded to per-branch affine; branch order (max, mean, sum)
        mx_bn = mx * sc[0:1, :] + sh[0:1, :]
        mean_bn = mean * sc[1:2, :] + sh[1:2, :]
        sum_bn = s * sc[2:3, :] + sh[2:3, :]
        x1 = jnp.concatenate([mx_bn, mean_bn, sum_bn], axis=0)             # (3*BT, F)

        def layernorm(v, g, beta):
            mu = jnp.mean(v, axis=-1, keepdims=True)
            var = jnp.mean((v - mu) ** 2, axis=-1, keepdims=True)
            return (v - mu) * jax.lax.rsqrt(var + LN_EPS) * g + beta

        # LN1 -> Linear(F, 64) -> ReLU -> Linear(64, F) -> +residual -> LN2 (dropouts = id)
        h = layernorm(x1, g1_ref[...], b1_ref[...])
        h = jnp.dot(h.astype(jnp.bfloat16), w11_ref[...],
                    preferred_element_type=jnp.float32) + bias11_ref[...]
        h = jnp.maximum(h, 0.0)
        h = jnp.dot(h.astype(jnp.bfloat16), w12_ref[...],
                    preferred_element_type=jnp.float32) + bias12_ref[...]
        out = layernorm(h + x1, g2_ref[...], b2_ref[...])                  # (3*BT, F)

        out_ref[...] = out[None]                                           # (1, 3*BT, F)


# ----------------------------------- Wrapper ----------------------------------------
def multi_pooling_forward(x, batch, params, num_graphs, *,
                          node_tile=128, graphs_per_block=8):
    """x: [N, F] f32 node features; batch: [N] sorted int32 graph ids -> [B, 3, F]."""
    N, F = x.shape
    B = num_graphs
    H = params["w11"].shape[1]

    TN = node_tile
    BT = graphs_per_block
    assert BT % 8 == 0, "graphs_per_block must be a multiple of 8 (sublane alignment)"

    T = -(-N // TN)
    N_pad = T * TN
    GB = -(-B // BT)
    B_pad = GB * BT

    batch = batch.astype(jnp.int32)
    x_pad = jnp.pad(x, ((0, N_pad - N), (0, 0)))          # padded rows belong to no graph

    # Contiguous segment offsets [B+1] (batch sorted, torch_geometric style).
    seg_off = jnp.searchsorted(batch, jnp.arange(B + 1, dtype=jnp.int32)).astype(jnp.int32)
    cnt = (seg_off[1:] - seg_off[:-1]).astype(jnp.float32)                 # [B]
    inv_cnt = 1.0 / jnp.maximum(cnt, 1.0)                                  # empty-graph guard
    inv_cnt = jnp.pad(inv_cnt, (0, B_pad - B), constant_values=1.0).reshape(B_pad, 1)

    # Graph-id range overlapping each node tile (drives the in-kernel segment loop).
    starts = jnp.arange(T, dtype=jnp.int32) * TN
    tile_lo = batch[jnp.minimum(starts, N - 1)]
    tile_hi = batch[jnp.minimum(starts + TN - 1, N - 1)]

    # Fold eval-mode BatchNorm1d into per-branch affine; branch order (max, mean, sum).
    scale_rows, shift_rows = [], []
    for name in ("b1", "b2", "b3"):
        g, beta, rm, rv = params[name]
        sc = g * jax.lax.rsqrt(rv + BN_EPS)
        scale_rows.append(sc)
        shift_rows.append(beta - rm * sc)
    scale = jnp.stack(scale_rows, axis=0)    # [3, F]
    shift = jnp.stack(shift_rows, axis=0)    # [3, F]

    def const(shape):
        nd = len(shape)
        return pl.BlockSpec(shape, lambda gb, t, seg, lo, hi, _nd=nd: (0,) * _nd)

    grid_spec = pltpu.PrefetchScalarGridSpec(
        num_scalar_prefetch=3,
        grid=(GB, T),
        in_specs=[
            pl.BlockSpec((TN, F), lambda gb, t, seg, lo, hi: (t, 0)),      # x node tile
            pl.BlockSpec((BT, 1), lambda gb, t, seg, lo, hi: (gb, 0)),     # inv_cnt block
            const((3, F)), const((3, F)),                                  # BN scale / shift
            const((1, F)), const((1, F)),                                  # LN1 gamma / beta
            const((F, H)), const((1, H)),                                  # w11 (bf16) / bias11
            const((H, F)), const((1, F)),                                  # w12 (bf16) / bias12
            const((1, F)), const((1, F)),                                  # LN2 gamma / beta
        ],
        out_specs=pl.BlockSpec((1, 3 * BT, F), lambda gb, t, seg, lo, hi: (gb, 0, 0)),
        scratch_shapes=[pltpu.VMEM((BT, F), jnp.float32),                  # acc_sum
                        pltpu.VMEM((BT, F), jnp.float32)],                 # acc_max
    )

    out = pl.pallas_call(
        functools.partial(_fused_kernel, BT=BT, TN=TN),
        out_shape=jax.ShapeDtypeStruct((GB, 3 * BT, F), jnp.float32),
        grid_spec=grid_spec,
        compiler_params=pltpu.CompilerParams(
            dimension_semantics=("parallel", "arbitrary")),
    )(
        seg_off, tile_lo, tile_hi,
        x_pad, inv_cnt, scale, shift,
        params["ln1_g"].reshape(1, F), params["ln1_b"].reshape(1, F),
        params["w11"].astype(jnp.bfloat16), params["bias11"].reshape(1, H),
        params["w12"].astype(jnp.bfloat16), params["bias12"].reshape(1, F),
        params["ln2_g"].reshape(1, F), params["ln2_b"].reshape(1, F),
    )

    # (GB, 3, BT, F) -> (B, 3, F): tiny layout-only transpose OUTSIDE the kernel
    # (kernel stores were already lane/sublane-dense; this is plumbing, not compute).
    out = out.reshape(GB, 3, BT, F).transpose(0, 2, 1, 3).reshape(B_pad, 3, F)
    return out[:B]


# ------------------------------ Pure-JAX reference ----------------------------------
def reference_forward(x, batch, params, B):
    s = jax.ops.segment_sum(x, batch, num_segments=B)
    cnt = jax.ops.segment_sum(jnp.ones((x.shape[0], 1), jnp.float32), batch, num_segments=B)
    mean = s / cnt
    mx = jax.ops.segment_max(x, batch, num_segments=B)

    def bn(v, p):
        g, beta, rm, rv = p
        return (v - rm) / jnp.sqrt(rv + BN_EPS) * g + beta

    x1 = jnp.stack([bn(mx, params["b1"]), bn(mean, params["b2"]), bn(s, params["b3"])], axis=1)

    def ln(v, g, b):
        mu = jnp.mean(v, axis=-1, keepdims=True)
        var = jnp.mean((v - mu) ** 2, axis=-1, keepdims=True)
        return (v - mu) / jnp.sqrt(var + LN_EPS) * g + b

    h = ln(x1, params["ln1_g"], params["ln1_b"])
    h = jax.nn.relu(h @ params["w11"] + params["bias11"])
    h = h @ params["w12"] + params["bias12"]
    return ln(h + x1, params["ln2_g"], params["ln2_b"])


# --------------------------------------- Main ----------------------------------------
if __name__ == "__main__":
    F = 128          # num_features (lane-dense)
    HID = 64         # hidden dim of l11/l12 (fixed by the module)
    B = 10           # graphs in the batch
    sizes = [23, 17, 31, 9, 25, 14, 28, 20, 12, 21]      # nodes per graph (sum = 200)
    N = int(np.sum(sizes))

    key = jax.random.PRNGKey(0)
    keys = jax.random.split(key, 16)

    def bn_params(k):
        k1, k2, k3, k4 = jax.random.split(k, 4)
        g = 1.0 + 0.1 * jax.random.normal(k1, (F,), jnp.float32)
        b = 0.1 * jax.random.normal(k2, (F,), jnp.float32)
        rm = 0.1 * jax.random.normal(k3, (F,), jnp.float32)
        rv = 1.0 + 0.1 * jax.random.uniform(k4, (F,), jnp.float32)
        return (g, b, rm, rv)

    params = {
        "b1": bn_params(keys[0]),
        "b2": bn_params(keys[1]),
        "b3": bn_params(keys[2]),
        "ln1_g": 1.0 + 0.1 * jax.random.normal(keys[3], (F,), jnp.float32),
        "ln1_b": 0.1 * jax.random.normal(keys[4], (F,), jnp.float32),
        "w11": 0.1 * jax.random.normal(keys[5], (F, HID), jnp.float32),   # Linear(F, 64), (in, out)
        "bias11": 0.1 * jax.random.normal(keys[6], (HID,), jnp.float32),
        "w12": 0.1 * jax.random.normal(keys[7], (HID, F), jnp.float32),   # Linear(64, F), (in, out)
        "bias12": 0.1 * jax.random.normal(keys[8], (F,), jnp.float32),
        "ln2_g": 1.0 + 0.1 * jax.random.normal(keys[9], (F,), jnp.float32),
        "ln2_b": 0.1 * jax.random.normal(keys[10], (F,), jnp.float32),
    }

    x = jax.random.normal(keys[11], (N, F), jnp.float32)
    batch = jnp.asarray(np.repeat(np.arange(B), sizes), dtype=jnp.int32)
    # edge_index is accepted by the torch forward() but never used; dummy here.
    edge_index = jax.random.randint(keys[12], (2, 64), 0, N)   # unused

    # node_tile=64, graphs_per_block=8 -> 4 node tiles, 2 graph blocks: exercises the
    # reduction axis, graphs crossing tile boundaries, the parallel graph-block axis,
    # and the padded-graph guard.  Use larger node_tile / graphs_per_block in production.
    out = multi_pooling_forward(x, batch, params, num_graphs=B,
                                node_tile=64, graphs_per_block=8)
    out = jax.block_until_ready(out)

    ref = reference_forward(x, batch, params, B)
    # Tolerance accounts for bf16 MXU rounding of the two matmuls (explicit bf16 casts
    # in the kernel vs. XLA's default f32 matmul precision in the reference).
    np.testing.assert_allclose(np.asarray(out), np.asarray(ref), rtol=1e-2, atol=1e-2)
    assert out.shape == (B, 3, F)

    print("KERNEL_OK")
</pallas_src>

<mosaic_0001>
module attributes {stable_mosaic.version = 11 : i64} {
  func.func @_fused_kernel(%arg0: i32, %arg1: i32, %arg2: memref<11xi32, #tpu.memory_space<smem>>, %arg3: memref<4xi32, #tpu.memory_space<smem>>, %arg4: memref<4xi32, #tpu.memory_space<smem>>, %arg5: memref<64x128xf32, #tpu.memory_space<vmem>>, %arg6: memref<8x1xf32, #tpu.memory_space<vmem>>, %arg7: memref<3x128xf32, #tpu.memory_space<vmem>>, %arg8: memref<3x128xf32, #tpu.memory_space<vmem>>, %arg9: memref<1x128xf32, #tpu.memory_space<vmem>>, %arg10: memref<1x128xf32, #tpu.memory_space<vmem>>, %arg11: memref<128x64xbf16, #tpu.memory_space<vmem>>, %arg12: memref<1x64xf32, #tpu.memory_space<vmem>>, %arg13: memref<64x128xbf16, #tpu.memory_space<vmem>>, %arg14: memref<1x128xf32, #tpu.memory_space<vmem>>, %arg15: memref<1x128xf32, #tpu.memory_space<vmem>>, %arg16: memref<1x128xf32, #tpu.memory_space<vmem>>, %arg17: memref<1x24x128xf32, #tpu.memory_space<vmem>>, %arg18: memref<8x128xf32, #tpu.memory_space<vmem>>, %arg19: memref<8x128xf32, #tpu.memory_space<vmem>>) attributes {dimension_semantics = [#tpu.dimension_semantics<parallel>, #tpu.dimension_semantics<arbitrary>], iteration_bounds = array<i64: 2, 4>, scalar_prefetch = 3 : i64, scratch_operands = 2 : i64, tpu.core_type = #tpu.core_type<tc>, window_params = [{transform_indices = @transform_0, window_bounds = array<i64: 64, 128>}, {transform_indices = @transform_1, window_bounds = array<i64: 8, 1>}, {pipeline_mode = #tpu.pipeline_mode<synchronous>, transform_indices = @transform_2, window_bounds = array<i64: 3, 128>}, {pipeline_mode = #tpu.pipeline_mode<synchronous>, transform_indices = @transform_3, window_bounds = array<i64: 3, 128>}, {pipeline_mode = #tpu.pipeline_mode<synchronous>, transform_indices = @transform_4, window_bounds = array<i64: 1, 128>}, {pipeline_mode = #tpu.pipeline_mode<synchronous>, transform_indices = @transform_5, window_bounds = array<i64: 1, 128>}, {pipeline_mode = #tpu.pipeline_mode<synchronous>, transform_indices = @transform_6, window_bounds = array<i64: 128, 64>}, {pipeline_mode = #tpu.pipeline_mode<synchronous>, transform_indices = @transform_7, window_bounds = array<i64: 1, 64>}, {pipeline_mode = #tpu.pipeline_mode<synchronous>, transform_indices = @transform_8, window_bounds = array<i64: 64, 128>}, {pipeline_mode = #tpu.pipeline_mode<synchronous>, transform_indices = @transform_9, window_bounds = array<i64: 1, 128>}, {pipeline_mode = #tpu.pipeline_mode<synchronous>, transform_indices = @transform_10, window_bounds = array<i64: 1, 128>}, {pipeline_mode = #tpu.pipeline_mode<synchronous>, transform_indices = @transform_11, window_bounds = array<i64: 1, 128>}, {transform_indices = @transform_12, window_bounds = array<i64: 1, 24, 128>}]} {
    %c0_i32 = arith.constant 0 : i32
    %0 = arith.cmpi eq, %arg1, %c0_i32 : i32
    %1 = arith.extui %0 : i1 to i32
    %c0_i32_0 = arith.constant 0 : i32
    %2 = arith.cmpi ne, %1, %c0_i32_0 : i32
    scf.if %2 {
      %cst = arith.constant 0.000000e+00 : f32
      %23 = vector.broadcast %cst : f32 to vector<8x128xf32>
      %c0_7 = arith.constant 0 : index
      %c0_8 = arith.constant 0 : index
      %24 = vector.load %arg18[%c0_7, %c0_8] : memref<8x128xf32, #tpu.memory_space<vmem>>, vector<8x128xf32>
      tpu.vector_store %arg18[%c0_7, %c0_8], %23 {strides = array<i32>} : memref<8x128xf32, #tpu.memory_space<vmem>>, vector<8x128xf32>,
      %cst_9 = arith.constant 0xFF800000 : f32
      %25 = vector.broadcast %cst_9 : f32 to vector<8x128xf32>
      %c0_10 = arith.constant 0 : index
      %c0_11 = arith.constant 0 : index
      %26 = vector.load %arg19[%c0_10, %c0_11] : memref<8x128xf32, #tpu.memory_space<vmem>>, vector<8x128xf32>
      tpu.vector_store %arg19[%c0_10, %c0_11], %25 {strides = array<i32>} : memref<8x128xf32, #tpu.memory_space<vmem>>, vector<8x128xf32>,
    } else {
    }
    %c0 = arith.constant 0 : index
    %c0_1 = arith.constant 0 : index
    %3 = vector.load %arg5[%c0, %c0_1] : memref<64x128xf32, #tpu.memory_space<vmem>>, vector<64x128xf32>
    %c64_i32 = arith.constant 64 : i32
    %4 = arith.muli %arg1, %c64_i32 : i32
    %5 = tpu.iota {dimensions = array<i32: 0>} : vector<64x1xi32>
    %6 = vector.broadcast %4 : i32 to vector<64x1xi32>
    %7 = arith.addi %6, %5 : vector<64x1xi32>
    %c8_i32 = arith.constant 8 : i32
    %8 = arith.muli %arg0, %c8_i32 : i32
    %9 = arith.index_cast %arg1 : i32 to index
    %10 = memref.load %arg3[%9] : memref<4xi32, #tpu.memory_space<smem>>
    %11 = arith.maxsi %10, %8 : i32
    %12 = arith.index_cast %arg1 : i32 to index
    %13 = memref.load %arg4[%12] : memref<4xi32, #tpu.memory_space<smem>>
    %c8_i32_2 = arith.constant 8 : i32
    %14 = arith.addi %8, %c8_i32_2 : i32
    %c1_i32 = arith.constant 1 : i32
    %15 = arith.subi %14, %c1_i32 : i32
    %16 = arith.minsi %13, %15 : i32
    %c1_i32_3 = arith.constant 1 : i32
    %17 = arith.addi %16, %c1_i32_3 : i32
    %c0_i32_4 = arith.constant 0 : i32
    %18 = arith.subi %17, %11 : i32
    %19 = arith.addi %11, %18 : i32
    %c1_i32_5 = arith.constant 1 : i32
    scf.for %arg20 = %11 to %19 step %c1_i32_5  : i32 {
      %23 = arith.index_cast %arg20 : i32 to index
      %24 = memref.load %arg2[%23] : memref<11xi32, #tpu.memory_space<smem>>
      %c1_i32_7 = arith.constant 1 : i32
      %25 = arith.addi %arg20, %c1_i32_7 : i32
      %26 = arith.index_cast %25 : i32 to index
      %27 = memref.load %arg2[%26] : memref<11xi32, #tpu.memory_space<smem>>
      %28 = vector.broadcast %24 : i32 to vector<64x1xi32>
      %29 = arith.cmpi sge, %7, %28 : vector<64x1xi32>
      %30 = vector.broadcast %27 : i32 to vector<64x1xi32>
      %31 = arith.cmpi slt, %7, %30 : vector<64x1xi32>
      %32 = arith.andi %29, %31 : vector<64x1xi1>
      %cst = arith.constant 0.000000e+00 : f32
      %33 = vector.shape_cast %32 : vector<64x1xi1> to vector<64x1xi1>
      %34 = vector.broadcast %33 : vector<64x1xi1> to vector<64x128xi1>
      %35 = vector.broadcast %cst : f32 to vector<64x128xf32>
      %36 = arith.select %34, %3, %35 : vector<64x128xi1>, vector<64x128xf32>
      %cst_8 = arith.constant dense<0.000000e+00> : vector<128xf32>
      %37 = vector.multi_reduction <add>, %36, %cst_8 [0] : vector<64x128xf32> to vector<128xf32>
      %38 = vector.shape_cast %37 : vector<128xf32> to vector<1x128xf32>
      %cst_9 = arith.constant 0xFF800000 : f32
      %39 = vector.shape_cast %32 : vector<64x1xi1> to vector<64x1xi1>
      %40 = vector.broadcast %39 : vector<64x1xi1> to vector<64x128xi1>
      %41 = vector.broadcast %cst_9 : f32 to vector<64x128xf32>
      %42 = arith.select %40, %3, %41 : vector<64x128xi1>, vector<64x128xf32>
      %cst_10 = arith.constant dense<0xFF800000> : vector<128xf32>
      %43 = vector.multi_reduction <maximumf>, %42, %cst_10 [0] : vector<64x128xf32> to vector<128xf32>
      %44 = vector.shape_cast %43 : vector<128xf32> to vector<1x128xf32>
      %45 = arith.subi %arg20, %8 : i32
      %46 = arith.index_cast %45 : i32 to index
      %c0_11 = arith.constant 0 : index
      %47 = vector.load %arg18[%46, %c0_11] : memref<8x128xf32, #tpu.memory_space<vmem>>, vector<1x128xf32>
      %48 = arith.addf %47, %38 : vector<1x128xf32>
      %49 = arith.index_cast %45 : i32 to index
      %c0_12 = arith.constant 0 : index
      %50 = vector.load %arg18[%49, %c0_12] : memref<8x128xf32, #tpu.memory_space<vmem>>, vector<1x128xf32>
      tpu.vector_store %arg18[%49, %c0_12], %48 {strides = array<i32>} : memref<8x128xf32, #tpu.memory_space<vmem>>, vector<1x128xf32>,
      %51 = arith.index_cast %45 : i32 to index
      %c0_13 = arith.constant 0 : index
      %52 = vector.load %arg19[%51, %c0_13] : memref<8x128xf32, #tpu.memory_space<vmem>>, vector<1x128xf32>
      %53 = arith.maximumf %52, %44 : vector<1x128xf32>
      %54 = arith.index_cast %45 : i32 to index
      %c0_14 = arith.constant 0 : index
      %55 = vector.load %arg19[%54, %c0_14] : memref<8x128xf32, #tpu.memory_space<vmem>>, vector<1x128xf32>
      tpu.vector_store %arg19[%54, %c0_14], %53 {strides = array<i32>} : memref<8x128xf32, #tpu.memory_space<vmem>>, vector<1x128xf32>,
    }
    %c3_i32 = arith.constant 3 : i32
    %20 = arith.cmpi eq, %arg1, %c3_i32 : i32
    %21 = arith.extui %20 : i1 to i32
    %c0_i32_6 = arith.constant 0 : i32
    %22 = arith.cmpi ne, %21, %c0_i32_6 : i32
    scf.if %22 {
      %c0_7 = arith.constant 0 : index
      %c0_8 = arith.constant 0 : index
      %23 = vector.load %arg18[%c0_7, %c0_8] : memref<8x128xf32, #tpu.memory_space<vmem>>, vector<8x128xf32>
      %c0_9 = arith.constant 0 : index
      %c0_10 = arith.constant 0 : index
      %24 = vector.load %arg19[%c0_9, %c0_10] : memref<8x128xf32, #tpu.memory_space<vmem>>, vector<8x128xf32>
      %cst = arith.constant 0xFF800000 : f32
      %25 = vector.broadcast %cst : f32 to vector<8x128xf32>
      %26 = arith.cmpf oeq, %24, %25 : vector<8x128xf32>
      %cst_11 = arith.constant 0.000000e+00 : f32
      %27 = vector.broadcast %cst_11 : f32 to vector<8x128xf32>
      %28 = arith.select %26, %27, %24 : vector<8x128xi1>, vector<8x128xf32>
      %c0_12 = arith.constant 0 : index
      %c0_13 = arith.constant 0 : index
      %29 = vector.load %arg6[%c0_12, %c0_13] : memref<8x1xf32, #tpu.memory_space<vmem>>, vector<8x1xf32>
      %30 = vector.broadcast %29 : vector<8x1xf32> to vector<8x128xf32>
      %31 = arith.mulf %23, %30 : vector<8x128xf32>
      %c0_14 = arith.constant 0 : index
      %c0_15 = arith.constant 0 : index
      %32 = vector.load %arg7[%c0_14, %c0_15] : memref<3x128xf32, #tpu.memory_space<vmem>>, vector<3x128xf32>
      %c0_16 = arith.constant 0 : index
      %c0_17 = arith.constant 0 : index
      %33 = vector.load %arg8[%c0_16, %c0_17] : memref<3x128xf32, #tpu.memory_space<vmem>>, vector<3x128xf32>
      %34 = vector.extract_strided_slice %32 {offsets = [0, 0], sizes = [1, 128], strides = [1, 1]} : vector<3x128xf32> to vector<1x128xf32>
      %35 = vector.broadcast %34 : vector<1x128xf32> to vector<8x128xf32>
      %36 = arith.mulf %28, %35 : vector<8x128xf32>
      %37 = vector.extract_strided_slice %33 {offsets = [0, 0], sizes = [1, 128], strides = [1, 1]} : vector<3x128xf32> to vector<1x128xf32>
      %38 = vector.broadcast %37 : vector<1x128xf32> to vector<8x128xf32>
      %39 = arith.addf %36, %38 : vector<8x128xf32>
      %40 = vector.extract_strided_slice %32 {offsets = [1, 0], sizes = [1, 128], strides = [1, 1]} : vector<3x128xf32> to vector<1x128xf32>
      %41 = vector.broadcast %40 : vector<1x128xf32> to vector<8x128xf32>
      %42 = arith.mulf %31, %41 : vector<8x128xf32>
      %43 = vector.extract_strided_slice %33 {offsets = [1, 0], sizes = [1, 128], strides = [1, 1]} : vector<3x128xf32> to vector<1x128xf32>
      %44 = vector.broadcast %43 : vector<1x128xf32> to vector<8x128xf32>
      %45 = arith.addf %42, %44 : vector<8x128xf32>
      %46 = vector.extract_strided_slice %32 {offsets = [2, 0], sizes = [1, 128], strides = [1, 1]} : vector<3x128xf32> to vector<1x128xf32>
      %47 = vector.broadcast %46 : vector<1x128xf32> to vector<8x128xf32>
      %48 = arith.mulf %23, %47 : vector<8x128xf32>
      %49 = vector.extract_strided_slice %33 {offsets = [2, 0], sizes = [1, 128], strides = [1, 1]} : vector<3x128xf32> to vector<1x128xf32>
      %50 = vector.broadcast %49 : vector<1x128xf32> to vector<8x128xf32>
      %51 = arith.addf %48, %50 : vector<8x128xf32>
      %52 = tpu.concatenate %39, %45, %51 in 0 : vector<8x128xf32>, vector<8x128xf32>, vector<8x128xf32> -> vector<24x128xf32>
      %c0_18 = arith.constant 0 : index
      %c0_19 = arith.constant 0 : index
      %53 = vector.load %arg9[%c0_18, %c0_19] : memref<1x128xf32, #tpu.memory_space<vmem>>, vector<1x128xf32>
      %c0_20 = arith.constant 0 : index
      %c0_21 = arith.constant 0 : index
      %54 = vector.load %arg10[%c0_20, %c0_21] : memref<1x128xf32, #tpu.memory_space<vmem>>, vector<1x128xf32>
      %cst_22 = arith.constant dense<0.000000e+00> : vector<24xf32>
      %55 = vector.multi_reduction <add>, %52, %cst_22 [1] : vector<24x128xf32> to vector<24xf32>
      %56 = vector.shape_cast %55 : vector<24xf32> to vector<24x1xf32>
      %cst_23 = arith.constant 1.280000e+02 : f32
      %57 = vector.broadcast %cst_23 : f32 to vector<24x1xf32>
      %58 = arith.divf %56, %57 : vector<24x1xf32>
      %59 = vector.broadcast %58 : vector<24x1xf32> to vector<24x128xf32>
      %60 = arith.subf %52, %59 : vector<24x128xf32>
      %61 = arith.mulf %60, %60 : vector<24x128xf32>
      %cst_24 = arith.constant dense<0.000000e+00> : vector<24xf32>
      %62 = vector.multi_reduction <add>, %61, %cst_24 [1] : vector<24x128xf32> to vector<24xf32>
      %63 = vector.shape_cast %62 : vector<24xf32> to vector<24x1xf32>
      %cst_25 = arith.constant 1.280000e+02 : f32
      %64 = vector.broadcast %cst_25 : f32 to vector<24x1xf32>
      %65 = arith.divf %63, %64 : vector<24x1xf32>
      %66 = vector.broadcast %58 : vector<24x1xf32> to vector<24x128xf32>
      %67 = arith.subf %52, %66 : vector<24x128xf32>
      %cst_26 = arith.constant 9.99999974E-6 : f32
      %68 = vector.broadcast %cst_26 : f32 to vector<24x1xf32>
      %69 = arith.addf %65, %68 : vector<24x1xf32>
      %70 = math.rsqrt %69 : vector<24x1xf32>
      %71 = vector.broadcast %70 : vector<24x1xf32> to vector<24x128xf32>
      %72 = arith.mulf %67, %71 : vector<24x128xf32>
      %73 = vector.broadcast %53 : vector<1x128xf32> to vector<24x128xf32>
      %74 = arith.mulf %72, %73 : vector<24x128xf32>
      %75 = vector.broadcast %54 : vector<1x128xf32> to vector<24x128xf32>
      %76 = arith.addf %74, %75 : vector<24x128xf32>
      %77 = arith.truncf %76 : vector<24x128xf32> to vector<24x128xbf16>
      %c0_27 = arith.constant 0 : index
      %c0_28 = arith.constant 0 : index
      %78 = vector.load %arg11[%c0_27, %c0_28] : memref<128x64xbf16, #tpu.memory_space<vmem>>, vector<128x64xbf16>
      %cst_29 = arith.constant dense<0.000000e+00> : vector<24x64xf32>
      %79 = tpu.matmul %77, %78, %cst_29 {dimension_numbers = #tpu.dot_dimension_numbers<[1], [0], [0], [1], [0, 0, 1, 1], [], []>} : vector<24x128xbf16>, vector<128x64xbf16>, vector<24x64xf32> -> vector<24x64xf32>
      %c0_30 = arith.constant 0 : index
      %c0_31 = arith.constant 0 : index
      %80 = vector.load %arg12[%c0_30, %c0_31] : memref<1x64xf32, #tpu.memory_space<vmem>>, vector<1x64xf32>
      %81 = vector.broadcast %80 : vector<1x64xf32> to vector<24x64xf32>
      %82 = arith.addf %79, %81 : vector<24x64xf32>
      %cst_32 = arith.constant 0.000000e+00 : f32
      %83 = vector.broadcast %cst_32 : f32 to vector<24x64xf32>
      %84 = arith.maximumf %82, %83 : vector<24x64xf32>
      %85 = arith.truncf %84 : vector<24x64xf32> to vector<24x64xbf16>
      %c0_33 = arith.constant 0 : index
      %c0_34 = arith.constant 0 : index
      %86 = vector.load %arg13[%c0_33, %c0_34] : memref<64x128xbf16, #tpu.memory_space<vmem>>, vector<64x128xbf16>
      %cst_35 = arith.constant dense<0.000000e+00> : vector<24x128xf32>
      %87 = tpu.matmul %85, %86, %cst_35 {dimension_numbers = #tpu.dot_dimension_numbers<[1], [0], [0], [1], [0, 0, 1, 1], [], []>} : vector<24x64xbf16>, vector<64x128xbf16>, vector<24x128xf32> -> vector<24x128xf32>
      %c0_36 = arith.constant 0 : index
      %c0_37 = arith.constant 0 : index
      %88 = vector.load %arg14[%c0_36, %c0_37] : memref<1x128xf32, #tpu.memory_space<vmem>>, vector<1x128xf32>
      %89 = vector.broadcast %88 : vector<1x128xf32> to vector<24x128xf32>
      %90 = arith.addf %87, %89 : vector<24x128xf32>
      %91 = arith.addf %90, %52 : vector<24x128xf32>
      %c0_38 = arith.constant 0 : index
      %c0_39 = arith.constant 0 : index
      %92 = vector.load %arg15[%c0_38, %c0_39] : memref<1x128xf32, #tpu.memory_space<vmem>>, vector<1x128xf32>
      %c0_40 = arith.constant 0 : index
      %c0_41 = arith.constant 0 : index
      %93 = vector.load %arg16[%c0_40, %c0_41] : memref<1x128xf32, #tpu.memory_space<vmem>>, vector<1x128xf32>
      %cst_42 = arith.constant dense<0.000000e+00> : vector<24xf32>
      %94 = vector.multi_reduction <add>, %91, %cst_42 [1] : vector<24x128xf32> to vector<24xf32>
      %95 = vector.shape_cast %94 : vector<24xf32> to vector<24x1xf32>
      %cst_43 = arith.constant 1.280000e+02 : f32
      %96 = vector.broadcast %cst_43 : f32 to vector<24x1xf32>
      %97 = arith.divf %95, %96 : vector<24x1xf32>
      %98 = vector.broadcast %97 : vector<24x1xf32> to vector<24x128xf32>
      %99 = arith.subf %91, %98 : vector<24x128xf32>
      %100 = arith.mulf %99, %99 : vector<24x128xf32>
      %cst_44 = arith.constant dense<0.000000e+00> : vector<24xf32>
      %101 = vector.multi_reduction <add>, %100, %cst_44 [1] : vector<24x128xf32> to vector<24xf32>
      %102 = vector.shape_cast %101 : vector<24xf32> to vector<24x1xf32>
      %cst_45 = arith.constant 1.280000e+02 : f32
      %103 = vector.broadcast %cst_45 : f32 to vector<24x1xf32>
      %104 = arith.divf %102, %103 : vector<24x1xf32>
      %105 = vector.broadcast %97 : vector<24x1xf32> to vector<24x128xf32>
      %106 = arith.subf %91, %105 : vector<24x128xf32>
      %cst_46 = arith.constant 9.99999974E-6 : f32
      %107 = vector.broadcast %cst_46 : f32 to vector<24x1xf32>
      %108 = arith.addf %104, %107 : vector<24x1xf32>
      %109 = math.rsqrt %108 : vector<24x1xf32>
      %110 = vector.broadcast %109 : vector<24x1xf32> to vector<24x128xf32>
      %111 = arith.mulf %106, %110 : vector<24x128xf32>
      %112 = vector.broadcast %92 : vector<1x128xf32> to vector<24x128xf32>
      %113 = arith.mulf %111, %112 : vector<24x128xf32>
      %114 = vector.broadcast %93 : vector<1x128xf32> to vector<24x128xf32>
      %115 = arith.addf %113, %114 : vector<24x128xf32>
      %116 = vector.shape_cast %115 : vector<24x128xf32> to vector<1x24x128xf32>
      %c0_47 = arith.constant 0 : index
      %c0_48 = arith.constant 0 : index
      %c0_49 = arith.constant 0 : index
      %117 = vector.load %arg17[%c0_47, %c0_48, %c0_49] : memref<1x24x128xf32, #tpu.memory_space<vmem>>, vector<1x24x128xf32>
      tpu.vector_store %arg17[%c0_47, %c0_48, %c0_49], %116 {strides = array<i32>} : memref<1x24x128xf32, #tpu.memory_space<vmem>>, vector<1x24x128xf32>,
    } else {
    }
    return
  }
  func.func @transform_0(%arg0: i32, %arg1: i32, %arg2: memref<11xi32, #tpu.memory_space<smem>>, %arg3: memref<4xi32, #tpu.memory_space<smem>>, %arg4: memref<4xi32, #tpu.memory_space<smem>>) -> (i32, i32) {
    %c0_i32 = arith.constant 0 : i32
    %c0_i32_0 = arith.constant 0 : i32
    return %arg1, %c0_i32 : i32, i32
  }
  func.func @transform_1(%arg0: i32, %arg1: i32, %arg2: memref<11xi32, #tpu.memory_space<smem>>, %arg3: memref<4xi32, #tpu.memory_space<smem>>, %arg4: memref<4xi32, #tpu.memory_space<smem>>) -> (i32, i32) {
    %c0_i32 = arith.constant 0 : i32
    %c0_i32_0 = arith.constant 0 : i32
    return %arg0, %c0_i32 : i32, i32
  }
  func.func @transform_2(%arg0: i32, %arg1: i32, %arg2: memref<11xi32, #tpu.memory_space<smem>>, %arg3: memref<4xi32, #tpu.memory_space<smem>>, %arg4: memref<4xi32, #tpu.memory_space<smem>>) -> (i32, i32) {
    %c0_i32 = arith.constant 0 : i32
    %c0_i32_0 = arith.constant 0 : i32
    %c0_i32_1 = arith.constant 0 : i32
    return %c0_i32, %c0_i32_0 : i32, i32
  }
  func.func @transform_3(%arg0: i32, %arg1: i32, %arg2: memref<11xi32, #tpu.memory_space<smem>>, %arg3: memref<4xi32, #tpu.memory_space<smem>>, %arg4: memref<4xi32, #tpu.memory_space<smem>>) -> (i32, i32) {
    %c0_i32 = arith.constant 0 : i32
    %c0_i32_0 = arith.constant 0 : i32
    %c0_i32_1 = arith.constant 0 : i32
    return %c0_i32, %c0_i32_0 : i32, i32
  }
  func.func @transform_4(%arg0: i32, %arg1: i32, %arg2: memref<11xi32, #tpu.memory_space<smem>>, %arg3: memref<4xi32, #tpu.memory_space<smem>>, %arg4: memref<4xi32, #tpu.memory_space<smem>>) -> (i32, i32) {
    %c0_i32 = arith.constant 0 : i32
    %c0_i32_0 = arith.constant 0 : i32
    %c0_i32_1 = arith.constant 0 : i32
    return %c0_i32, %c0_i32_0 : i32, i32
  }
  func.func @transform_5(%arg0: i32, %arg1: i32, %arg2: memref<11xi32, #tpu.memory_space<smem>>, %arg3: memref<4xi32, #tpu.memory_space<smem>>, %arg4: memref<4xi32, #tpu.memory_space<smem>>) -> (i32, i32) {
    %c0_i32 = arith.constant 0 : i32
    %c0_i32_0 = arith.constant 0 : i32
    %c0_i32_1 = arith.constant 0 : i32
    return %c0_i32, %c0_i32_0 : i32, i32
  }
  func.func @transform_6(%arg0: i32, %arg1: i32, %arg2: memref<11xi32, #tpu.memory_space<smem>>, %arg3: memref<4xi32, #tpu.memory_space<smem>>, %arg4: memref<4xi32, #tpu.memory_space<smem>>) -> (i32, i32) {
    %c0_i32 = arith.constant 0 : i32
    %c0_i32_0 = arith.constant 0 : i32
    %c0_i32_1 = arith.constant 0 : i32
    return %c0_i32, %c0_i32_0 : i32, i32
  }
  func.func @transform_7(%arg0: i32, %arg1: i32, %arg2: memref<11xi32, #tpu.memory_space<smem>>, %arg3: memref<4xi32, #tpu.memory_space<smem>>, %arg4: memref<4xi32, #tpu.memory_space<smem>>) -> (i32, i32) {
    %c0_i32 = arith.constant 0 : i32
    %c0_i32_0 = arith.constant 0 : i32
    %c0_i32_1 = arith.constant 0 : i32
    return %c0_i32, %c0_i32_0 : i32, i32
  }
  func.func @transform_8(%arg0: i32, %arg1: i32, %arg2: memref<11xi32, #tpu.memory_space<smem>>, %arg3: memref<4xi32, #tpu.memory_space<smem>>, %arg4: memref<4xi32, #tpu.memory_space<smem>>) -> (i32, i32) {
    %c0_i32 = arith.constant 0 : i32
    %c0_i32_0 = arith.constant 0 : i32
    %c0_i32_1 = arith.constant 0 : i32
    return %c0_i32, %c0_i32_0 : i32, i32
  }
  func.func @transform_9(%arg0: i32, %arg1: i32, %arg2: memref<11xi32, #tpu.memory_space<smem>>, %arg3: memref<4xi32, #tpu.memory_space<smem>>, %arg4: memref<4xi32, #tpu.memory_space<smem>>) -> (i32, i32) {
    %c0_i32 = arith.constant 0 : i32
    %c0_i32_0 = arith.constant 0 : i32
    %c0_i32_1 = arith.constant 0 : i32
    return %c0_i32, %c0_i32_0 : i32, i32
  }
  func.func @transform_10(%arg0: i32, %arg1: i32, %arg2: memref<11xi32, #tpu.memory_space<smem>>, %arg3: memref<4xi32, #tpu.memory_space<smem>>, %arg4: memref<4xi32, #tpu.memory_space<smem>>) -> (i32, i32) {
    %c0_i32 = arith.constant 0 : i32
    %c0_i32_0 = arith.constant 0 : i32
    %c0_i32_1 = arith.constant 0 : i32
    return %c0_i32, %c0_i32_0 : i32, i32
  }
  func.func @transform_11(%arg0: i32, %arg1: i32, %arg2: memref<11xi32, #tpu.memory_space<smem>>, %arg3: memref<4xi32, #tpu.memory_space<smem>>, %arg4: memref<4xi32, #tpu.memory_space<smem>>) -> (i32, i32) {
    %c0_i32 = arith.constant 0 : i32
    %c0_i32_0 = arith.constant 0 : i32
    %c0_i32_1 = arith.constant 0 : i32
    return %c0_i32, %c0_i32_0 : i32, i32
  }
  func.func @transform_12(%arg0: i32, %arg1: i32, %arg2: memref<11xi32, #tpu.memory_space<smem>>, %arg3: memref<4xi32, #tpu.memory_space<smem>>, %arg4: memref<4xi32, #tpu.memory_space<smem>>) -> (i32, i32, i32) {
    %c0_i32 = arith.constant 0 : i32
    %c0_i32_0 = arith.constant 0 : i32
    %c0_i32_1 = arith.constant 0 : i32
    return %arg0, %c0_i32, %c0_i32_0 : i32, i32, i32
  }
}

</mosaic_0001>

<bundles_post_ra>
// kernel: tpu_custom_call.1
= control target key start
LH: loop header
LB: loop body
LE: loop exit
PB: predicated region body
PF: predicated region fallthrough
CT: control target
= control target key end

     0   :  { %s2117_s0 = inlined_call_operand.vmem [shape: s32[11], index: 0, kind: input, shape index: {}]   ;;  %s2118_s3 = inlined_call_operand.hbm [shape: f32[256,128], index: 3, kind: input, shape index: {}]   ;;  %s2119_s4 = inlined_call_operand.vmem [shape: f32[16,1], index: 4, kind: input, shape index: {}]   ;;  %s2120_s5 = inlined_call_operand.vmem [shape: f32[3,128], index: 5, kind: input, shape index: {}]   ;;  %s2121_s6 = inlined_call_operand.vmem [shape: f32[3,128], index: 6, kind: input, shape index: {}]   ;;  %s2122_s7 = inlined_call_operand.vmem [shape: f32[1,128], index: 7, kind: input, shape index: {}]   ;;  %s2123_s8 = inlined_call_operand.vmem [shape: f32[1,128], index: 8, kind: input, shape index: {}]   ;;  %s2124_s9 = inlined_call_operand.vmem [shape: bf16[128,64], index: 9, kind: input, shape index: {}]   ;;  %s2125_s10 = inlined_call_operand.vmem [shape: f32[1,64], index: 10, kind: input, shape index: {}]   ;;  %s2126_s11 = inlined_call_operand.vmem [shape: bf16[64,128], index: 11, kind: input, shape index: {}]   ;;  %s2127_s12 = inlined_call_operand.vmem [shape: f32[1,128], index: 12, kind: input, shape index: {}]   ;;  %s2128_s13 = inlined_call_operand.vmem [shape: f32[1,128], index: 13, kind: input, shape index: {}]   ;;  %s2129_s14 = inlined_call_operand.vmem [shape: f32[1,128], index: 14, kind: input, shape index: {}]   ;;  %s2130_s15 = inlined_call_operand.hbm [shape: f32[2,24,128], index: 15, kind: output, shape index: {}]   ;;  %s2131_s1 = inlined_call_operand.vmem [shape: s32[4], index: 1, kind: input, shape index: {}]   ;;  %s2132_s2 = inlined_call_operand.vmem [shape: s32[4], index: 2, kind: input, shape index: {}]  }
   0x1   :  { %2141 = sst [smem:[#allocation24_spill]] %s2127_s12  ;;  %s20_s20 = sshll.u32 %s2117_s0, 4  ;;  %s21_s20 = int_to_ptr.vmem [resolvable:$true] %s20_s20 }
   0x2   :  { %2142 = sst [smem:[#allocation25_spill]] %s2128_s13  ;;  %s24_s23 = sshll.u32 %s2131_s1, 4  ;;  %s25_s23 = int_to_ptr.vmem [resolvable:$true] %s24_s23 }
   0x3   :  { %2143 = sst [smem:[#allocation26_spill]] %s2129_s14  ;;  %s1354_s24 = scalar_lea.vmem %s21_s20, 16 }
   0x4   :  { %2144 = sst [smem:[#allocation27_spill]] %s2130_s15  ;;  %p1355_p0 = scmp.ne.s32.totalorder %s21_s20, %s1354_s24 }
   0x5   :  { %p1359_p1 = scmp.lt.s32.totalorder %s21_s20, %s21_s20  ;;  %p1360_p2 = scmp.lt.s32.totalorder %s1354_s24, %s1354_s24 }
   0x7   :  { %p1361_p3 = por %p1360_p2, %p1359_p1 }
   0x9   :  { %p1362_p4 = pnand %p1361_p3, %p1355_p0 }
   0xb   :  { %1365 = shalt.err (!%p1362_p4)  }
   0xc   :  { %s1550_s25 = smov [#allocation5]   ;;  %s1366_s26 = scalar_lea.vmem %s25_s23, 16 }
   0xd   :  { %23 = dma.vmem_to_smem %s21_s20, 16, %s1550_s25, [#allocation4] }
   0xe   :  { %p1367_p5 = scmp.ne.s32.totalorder %s25_s23, %s1366_s26  ;;  %p1371_p6 = scmp.lt.s32.totalorder %s25_s23, %s25_s23 }
   0xf   :  { %p1372_p7 = scmp.lt.s32.totalorder %s1366_s26, %s1366_s26 }
  0x11   :  { %p1373_p8 = por %p1372_p7, %p1371_p6 }
  0x13   :  { %p1374_p9 = pnand %p1373_p8, %p1367_p5 }
  0x15   :  { %1377 = shalt.err (!%p1374_p9)  }
  0x16   :  { %s1551_s0 = smov [#allocation6]   ;;  %s28_s28 = sshll.u32 %s2132_s2, 4  ;;  %s29_s28 = int_to_ptr.vmem [resolvable:$true] %s28_s28 }
  0x17   :  { %27 = dma.vmem_to_smem %s25_s23, 16, %s1551_s0, [#allocation4] }
  0x18   :  { %s1378_s29 = scalar_lea.vmem %s29_s28, 16  ;;  %p1383_p11 = scmp.lt.s32.totalorder %s29_s28, %s29_s28 }
  0x19   :  { %p1379_p10 = scmp.ne.s32.totalorder %s29_s28, %s1378_s29  ;;  %p1384_p12 = scmp.lt.s32.totalorder %s1378_s29, %s1378_s29 }
  0x1b   :  { %p1385_p13 = por %p1384_p12, %p1383_p11 }
  0x1d   :  { %p1386_p0 = pnand %p1385_p13, %p1379_p10 }
  0x1f   :  { %1389 = shalt.err (!%p1386_p0)  }
  0x20   :  { %s1552_s30 = smov [#allocation7]  }
  0x21   :  { %31 = dma.vmem_to_smem %s29_s28, 16, %s1552_s30, [#allocation4] }
  0x22   :  { %1492 = dma.done.wait [#allocation4], 48 }
  0x23   :  { %1493 = vsyncadd [#allocation4], 4294967248 }
  0x24   :  { %33 = sfence }
  0x25   :  { %34 = vsyncpa [#allocation9], 0 }
  0x26   :  { %36 = vsyncpa [#allocation9 + $0x1], 0 }
  0x27   :  { %37 = vsyncpa [#allocation10], 0 }
  0x28   :  { %39 = vsyncpa [#allocation10 + $0x1], 0  ;;  %s1651_s16 = smov 0   ;;  %s1653_s2 = smov 0  }
  0x29   :  { %s1655_s17 = smov 0   ;;  %s1657_s18 = smov 0  }
  0x2a   :  { %s1659_s19 = smov 0   ;;  %s1661_s20 = smov 0  }
  0x2b   :  { %s1663_s21 = smov 0   ;;  %s1665_s22 = smov 0  }
  0x2c   :  { %s1667_s23 = smov 0   ;;  %s1669_s24 = smov 0  }
  0x2d   :  { %s1671_s25 = smov 0  }
  0x2e LB: > { %2145 = sst [smem:[#allocation15_spill]] %s1512_s17  ;;  %s1121_s26 = sadd.s32 4294967295, %s1544_s25   ;;  %s1544_s25 = sphi %s1671_s25, %s45_s25   ;;  %s1540_s24 = sphi %s1669_s24, %s2188_s24   ;;  %s1536_s23 = sphi %s1667_s23, %s2187_s23   ;;  %s1532_s22 = sphi %s1665_s22, %s2186_s22   ;;  %s1528_s21 = sphi %s1663_s21, %s2185_s21   ;;  %s1524_s20 = sphi %s1661_s20, %s2184_s20   ;;  %s1520_s19 = sphi %s1659_s19, %s2192_s19   ;;  %s1516_s18 = sphi %s1657_s18, %s2191_s18   ;;  %s1512_s17 = sphi %s1655_s17, %s2182_s17   ;;  %s1508_s2 = sphi %s1653_s2, %s2190_s2   ;;  %s1504_s16 = sphi %s1651_s16, %s2189_s16  }
  0x2f   : > { %2146 = sst [smem:[#allocation16_spill]] %s1524_s20  ;;  %s1122_s0 = sadd.s32 4294967294, %s1544_s25  }
  0x30   : > { %2147 = sst [smem:[#allocation17_spill]] %s1536_s23  ;;  %s54_s1 = sadd.s32 1, %s1536_s23 }
  0x31   : > { %2148 = sst [smem:[#allocation18_spill]] %s1540_s24  ;;  %s57_s27 = sadd.s32 1, %s1540_s24 }
  0x32   : > { %p55_p1 = scmp.ge.s32.totalorder %s54_s1, 4  ;;  %s64_s28 = sadd.s32 1, %s1524_s20 }
  0x33   : > { %p71_p2 = scmp.ne.s32.totalorder %s1524_s20, %s1520_s19  ;;  %p72_p3 = scmp.eq.s32.totalorder %s1544_s25, 0 }
  0x34   : > { %s2194_s1 = smov (%p55_p1, %s54_s1), 0  ;;  %s2196_s27 = smov (!%p55_p1, %s57_s27), %s1540_s24 }
  0x35   : > { %2149 = sst [smem:[#allocation19_spill]] %s2194_s1  ;;  %s61_s29 = ssub.s32 %s1536_s23, %s2194_s1 }
  0x36   : > { %p1717_p4 = por %p72_p3, %p71_p2  ;;  %p59_p5 = scmp.ge.s32.totalorder %s2196_s27, 2 }
  0x37   : > { %p62_p6 = scmp.eq.s32.totalorder %s61_s29, 0  ;;  %p77_p7 = scmp.ne.s32.totalorder %s1520_s19, %s1516_s18 }
  0x38   : > { %p78_p8 = scmp.eq.s32.totalorder %s1121_s26, 0  ;;  %s2198_s27 = smov (%p59_p5, %s2196_s27), 0 }
  0x39   : > { %2151 = sst [smem:[#allocation20_spill]] %s2198_s27  ;;  %s323_s14 = ssub.s32 %s1540_s24, %s2198_s27 }
  0x3a   : > { %s1725_s15 = scalar_select %p62_p6, %s1524_s20, %s64_s28  }
  0x3b   : > { %p1727_p9 = por %p78_p8, %p77_p7  ;;  %p324_p10 = scmp.eq.s32.totalorder %s323_s14, 0 }
  0x3c   : > { %2152 = sst [smem:[#allocation21_spill]] %s1725_s15  ;;  %s326_s13 = sadd.s32 1, %s1512_s17 }
  0x3d   : > { %p336_p11 = scmp.ne.s32.totalorder %s1512_s17, %s1508_s2  ;;  %p337_p12 = scmp.eq.s32.totalorder %s1121_s26, 7 }
  0x3e   : > { %s1737_s29 = scalar_select %p324_p10, %s1512_s17, %s326_s13  }
  0x3f   : > { %p1739_p13 = por %p337_p12, %p336_p11  ;;  %p342_p0 = scmp.ne.s32.totalorder %s1508_s2, %s1504_s16 }
  0x40   : > { %2154 = sst [smem:[#allocation22_spill]] %s1737_s29  ;;  %p343_p1 = scmp.eq.s32.totalorder %s1122_s0, 7 }
  0x41   : > { %p1221_p2 = scmp.lt.s32.totalorder %s1544_s25, 8  ;;  %s393_s28 = sand.u32 1, %s1524_s20  }
  0x42   : > { %p1747_p3 = por %p343_p1, %p342_p0  ;;  %s1125_s27 = sshll.u32 %s393_s28, 6 }
  0x43   : > { %s1158_s14 = sshll.u32 %s1536_s23, 10  ;;  %s397_s13 = scalar_lea.vmem [#allocation8], %s1125_s27 }
  0x44   : > { %s2156_s15 = scalar_select %p1747_p3, 1, 0 }
  0x45   : > { %s403_s26 = scalar_lea.hbm %s2118_s3, %s1158_s14  ;;  %s404_s29 = sshll.u32 %s397_s13, 4  ;;  %s405_s29 = int_to_ptr.vmem [resolvable:$true] %s404_s29 }
  0x46   : > { %2157 = sst [smem:[#allocation23_spill]] %s2156_s15  ;;  %p1757_p5 = pnand %p1221_p2, %p1717_p4 }
  0x47   : > { %s394_s0 = scalar_lea.sflag [#allocation9], %s393_s28  ;;  %s1403_s20 = scalar_lea.vmem %s405_s29, 1024 }
  0x48   : > { %p1392_p6 = pneg %p1757_p5  ;;  %p1404_p7 = scmp.ne.s32.totalorder %s405_s29, %s1403_s20 }
  0x49   : > { %s1553_s23 = smov [#allocation8]  }
  0x4a   : > { %p1406_p8 = pnand %p1404_p7, %p1392_p6  ;;  %s1408_s15 = sshll.u32 %s1553_s23, 4  ;;  %s1409_s15 = int_to_ptr.vmem [resolvable:$false] %s1408_s15 }
  0x4b   : > { %s1410_s12 = scalar_lea.vmem %s1409_s15, 2048  ;;  %p1411_p11 = scmp.lt.s32.totalorder %s405_s29, %s1409_s15 }
  0x4c   : > { %p1407_p10 = pneg %p1406_p8  ;;  %p1412_p12 = scmp.lt.s32.totalorder %s1410_s12, %s1403_s20 }
  0x4e   : > { %p1413_p0 = por %p1412_p12, %p1411_p11 }
  0x50   : > { %p1414_p4 = pnand %p1413_p0, %p1407_p10 }
  0x52   : > { %1417 = shalt.err (!%p1414_p4)
}
  0x53   : > { %s1554_s24 = smov 128   ;;  %s1555_s27 = smov 8  }
  0x54   : > { %1216 = dma.hbm_to_vmem [thread:$0]  (!%p1757_p5), %s403_s26, 1024, %s405_s29, %s394_s0, %s1554_s24, %s1554_s24, %s1555_s27  }
  0x55   : > { %p1128_p1 = scmp.ge.s32.totalorder %s1544_s25, 1  ;;  %p419_p2 = scmp.lt.s32.totalorder %s1544_s25, 9 }
  0x57   : > { %p420_p6 = pnand %p1128_p1, %p419_p2 }
  0x58   : > { %s425_s23 = sand.u32 (!%p420_p6), 1, %s1520_s19  }
  0x59   : > { %423 = sbr.rel (%p420_p6) target bundleno = 1360 (0x550), region = 68  ;;  %s1129_s30 = sshll.u32 (!%p420_p6), %s425_s23, 6 }
  0x5a   : > { %s426_s15 = scalar_lea.sflag (!%p420_p6), [#allocation9], %s425_s23  ;;  %s429_s20 = scalar_lea.vmem (!%p420_p6), [#allocation8], %s1129_s30 }
  0x5e   : > { %1495 = dma.done.wait (%p1727_p9), %s426_s15, 1024  }
  0x5f   : > { %1497 = vsyncadd (%p1727_p9), %s426_s15, 4294966272  ;;  %s471_s17 = sand.u32 1, %s1508_s2   ;;  %p475_p5 = scmp.lt.s32.totalorder %s1532_s22, 1 }
  0x60   : > { %s1207_s29 = smul.u32 24, %s471_s17  ;;  %p1131_p7 = scmp.ne.s32.totalorder %s1528_s21, 0 }
  0x61   : > { %s476_s28 = scalar_select %p475_p5, %s1532_s22, 1 }
  0x62   : > { %s1782_s12 = scalar_lea.vmem [#allocation11], %s1207_s29  ;;  %483 = sbr.rel (%p1131_p7) target bundleno = 105 (0x69), region = 76 }
  0x63   : > { %s1130_s14 = sshll.u32 %s476_s28, 3 }
  0x64   : > { %s1780_s0 = scalar_lea.vmem %s2119_s4, %s1130_s14 }
  0x67   : > { %v1556_v0 = vmov 0.0   ;;  %v1557_v1 = vmov -inf  }
  0x68   : > { %484 = vst [vmem:[#allocation2] sm:$0xff] %v1556_v0  ;;  %485 = vst [vmem:[#allocation3] sm:$0xff] %v1557_v1 }
  0x69 PF: > { %v1785_v2 = vld [vmem:[%s429_s20] sm:$0xff]  ;;  %v1787_v3 = vld [vmem:[%s429_s20 + $0x8] sm:$0xff]  ;;  %v1789_v4 = vld [vmem:[%s429_s20 + $0x10] sm:$0xff]  ;;  %s1132_s1 = sshll.u32 %s1528_s21, 6  ;;  %v495_v5 = vlaneseq  ;;  %s514_s24 = sld [smem:[#allocation6 + %s1528_s21]] }
  0x6a   : > { %v1792_v6 = vld [vmem:[%s429_s20 + $0x18] sm:$0xff]  ;;  %v1794_v7 = vld [vmem:[%s429_s20 + $0x20] sm:$0xff]  ;;  %v1796_v8 = vld [vmem:[%s429_s20 + $0x28] sm:$0xff]  ;;  %v504_v12 = vstv %s1132_s1  ;;  %s1806_s27 = sshll.u32 %s1532_s22, 3  ;;  %s517_s23 = sld [smem:[#allocation7 + %s1528_s21]] }
  0x6b   : > { %v1799_v9 = vld [vmem:[%s429_s20 + $0x30] sm:$0xff]  ;;  %v1801_v10 = vld [vmem:[%s429_s20 + $0x38] sm:$0xff]  ;;  %v1803_v11 = vshrl.u32 %v495_v5, 7  ;;  %s518_s30 = sadd.s32 7, %s1806_s27 }
  0x6d   : > { %v497_v13 = vadd.s32 8, %v1803_v11  ;;  %v498_v14 = vadd.s32 16, %v1803_v11  ;;  %v499_v15 = vadd.s32 24, %v1803_v11  ;;  %v500_v16 = vadd.s32 32, %v1803_v11 }
  0x6e   : > { %v501_v17 = vadd.s32 40, %v1803_v11  ;;  %v502_v18 = vadd.s32 48, %v1803_v11  ;;  %v503_v19 = vadd.s32 56, %v1803_v11  ;;  %v1817_v20 = vadd.s32 %v504_v12, %v1803_v11 }
  0x6f   : > { %v1820_v21 = vadd.s32 %v504_v12, %v497_v13  ;;  %v1822_v22 = vadd.s32 %v504_v12, %v498_v14  ;;  %v1824_v23 = vadd.s32 %v504_v12, %v499_v15  ;;  %v1826_v24 = vadd.s32 %v504_v12, %v500_v16  ;;  %p515_p9 = scmp.gt.s32.totalorder %s514_s24, %s1806_s27 }
  0x70   : > { %v1828_v25 = vadd.s32 %v504_v12, %v501_v17  ;;  %v1830_v26 = vadd.s32 %v504_v12, %v502_v18  ;;  %v1832_v27 = vadd.s32 %v504_v12, %v503_v19  ;;  %p519_p8 = scmp.lt.s32.totalorder %s517_s23, %s518_s30 }
  0x71   : > { %s2200_s24 = smov (!%p515_p9, %s514_s24), %s1806_s27 }
  0x72   : > { %s2202_s23 = smov (!%p519_p8, %s517_s23), %s518_s30 }
  0x73   : > { %s521_s15 = sadd.s32 1, %s2202_s23 }
  0x74   : > { %p1076_p10 = scmp.ge.s32.totalorder %s2200_s24, %s521_s15 }
  0x76   : > { %1077 = sbr.rel (%p1076_p10) target bundleno = 164 (0xa4), region = 127 }
  0x7b LB: >> { %s528_s20 = sld [smem:[#allocation5 + %s1548_s24]]  ;;  %s1848_s29 = sadd.s32 1, %s1548_s24   ;;  %s1548_s24 = sphi %s2200_s24, %s2175_s24  }
  0x7c   : >> { %s530_s28 = sld [smem:[#allocation5 + %s1848_s29]]  ;;  %s615_s14 = ssub.s32 %s1548_s24, %s1806_s27 }
  0x7d   : >> { %s620_s26 = scalar_lea.vmem [#allocation3], %s615_s14  ;;  %s616_s13 = scalar_lea.vmem [#allocation2], %s615_s14 }
  0x7e   : >> { %v621_v30 = vld [vmem:[%s620_s26] sm:$0x1]  ;;  %p524_p11 = scmp.ge.s32.totalorder %s1848_s29, %s521_s15  ;;  %s2175_s24 = smov %s1848_s29 }
  0x7f   : >> { %v617_v33 = vld [vmem:[%s616_s13] sm:$0x1] }
  0x81   : >> { %v531_v28 = vstv %s528_s20 }
  0x82   : >> { %vm532_vm0 = vcmp.ge.s32.totalorder %v1817_v20, %v531_v28  ;;  %vm533_vm1 = vcmp.ge.s32.totalorder %v1820_v21, %v531_v28  ;;  %v540_v29 = vstv %s530_s28  ;;  %vm534_vm2 = vcmp.ge.s32.totalorder %v1822_v22, %v531_v28 }
  0x83   : >> { %vm541_vm3 = vcmp.lt.s32.totalorder %v1817_v20, %v540_v29  ;;  %vm542_vm4 = vcmp.lt.s32.totalorder %v1820_v21, %v540_v29  ;;  %vm543_vm5 = vcmp.lt.s32.totalorder %v1822_v22, %v540_v29  ;;  %vm535_vm6 = vcmp.ge.s32.totalorder %v1824_v23, %v531_v28 }
  0x84   : >> { %vm544_vm7 = vcmp.lt.s32.totalorder %v1824_v23, %v540_v29  ;;  %vm1859_vm8 = vmand %vm532_vm0, %vm541_vm3  ;;  %vm536_vm9 = vcmp.ge.s32.totalorder %v1826_v24, %v531_v28  ;;  %vm545_vm10 = vcmp.lt.s32.totalorder %v1826_v24, %v540_v29  ;;  %vm537_vm12 = vcmp.ge.s32.totalorder %v1828_v25, %v531_v28 }
  0x85   : >> { %vm1865_vm11 = vmand %vm533_vm1, %vm542_vm4  ;;  %v573_v32 = vsel %vm1859_vm8, %v1785_v2, 0.0  ;;  %vm538_vm13 = vcmp.ge.s32.totalorder %v1830_v26, %v531_v28  ;;  %vm546_vm14 = vcmp.lt.s32.totalorder %v1828_v25, %v540_v29  ;;  %vm547_vm0 = vcmp.lt.s32.totalorder %v1830_v26, %v540_v29 }
  0x86   : >> { %vm1875_vm15 = vmand %vm534_vm2, %vm543_vm5  ;;  %v574_v34 = vsel %vm1865_vm11, %v1787_v3, 0.0  ;;  %v594_v38 = vsel %vm1859_vm8, %v1785_v2, -inf  ;;  %vm539_vm2 = vcmp.ge.s32.totalorder %v1832_v27, %v531_v28  ;;  %vm548_vm3 = vcmp.lt.s32.totalorder %v1832_v27, %v540_v29 }
  0x87   : >> { %vm1883_vm1 = vmand %vm535_vm6, %vm544_vm7  ;;  %v575_v36 = vsel %vm1875_vm15, %v1789_v4, 0.0  ;;  %v581_v37 = vadd.f32 %v574_v34, %v573_v32  ;;  %v595_v41 = vsel %vm1865_vm11, %v1787_v3, -inf  ;;  %v596_v44 = vsel %vm1875_vm15, %v1789_v4, -inf }
  0x88   : >> { %vm1899_vm4 = vmand %vm536_vm9, %vm545_vm10  ;;  %v576_v40 = vsel %vm1883_vm1, %v1792_v6, 0.0  ;;  %v597_v48 = vsel %vm1883_vm1, %v1792_v6, -inf }
  0x89   : >> { %vm1911_vm5 = vmand %vm537_vm12, %vm546_vm14  ;;  %v582_v43 = vadd.f32 %v581_v37, %v575_v36  ;;  %v598_v45 = vsel %vm1899_vm4, %v1794_v7, -inf  ;;  %v577_v47 = vsel %vm1899_vm4, %v1794_v7, 0.0 }
  0x8a   : >> { %vm1923_vm6 = vmand %vm538_vm13, %vm547_vm0  ;;  %v599_v49 = vsel %vm1911_vm5, %v1796_v8, -inf  ;;  %v602_v50 = vmax.f32 %v594_v38, %v598_v45  ;;  %v578_v55 = vsel %vm1911_vm5, %v1796_v8, 0.0 }
  0x8b   : >> { %vm1936_vm7 = vmand %vm539_vm2, %vm548_vm3  ;;  %v583_v52 = vadd.f32 %v582_v43, %v576_v40  ;;  %v600_v53 = vsel %vm1923_vm6, %v1799_v9, -inf  ;;  %v603_v54 = vmax.f32 %v595_v41, %v599_v49  ;;  %v579_v61 = vsel %vm1923_vm6, %v1799_v9, 0.0 }
  0x8c   : >> { %v601_v56 = vsel %vm1936_vm7, %v1801_v10, -inf  ;;  %v604_v57 = vmax.f32 %v596_v44, %v600_v53  ;;  %v580_v0 = vsel %vm1936_vm7, %v1801_v10, 0.0 }
  0x8d   : >> { %v584_v58 = vadd.f32 %v583_v52, %v577_v47  ;;  %v605_v59 = vmax.f32 %v597_v48, %v601_v56  ;;  %v606_v60 = vmax.f32 %v602_v50, %v603_v54 }
  0x8f   : >> { %v585_v62 = vadd.f32 %v584_v58, %v578_v55  ;;  %v607_v63 = vmax.f32 %v604_v57, %v605_v59 }
  0x91   : >> { %v586_v1 = vadd.f32 %v585_v62, %v579_v61  ;;  %v608_v5 = vmax.f32 %v606_v60, %v607_v63 }
  0x93   : >> { %v587_v12 = vadd.f32 %v586_v1, %v580_v0  ;;  %v609_v13 = vrot.slane %v608_v5, 4 }
  0x95   : >> { %v588_v14 = vrot.slane %v587_v12, 4  ;;  %v610_v15 = vmax.f32 %v608_v5, %v609_v13 }
  0x97   : >> { %v589_v16 = vadd.f32 %v588_v14, %v587_v12  ;;  %v611_v17 = vrot.slane %v610_v15, 2 }
  0x99   : >> { %v590_v18 = vrot.slane %v589_v16, 2  ;;  %v612_v19 = vmax.f32 %v610_v15, %v611_v17 }
  0x9b   : >> { %v591_v28 = vadd.f32 %v590_v18, %v589_v16  ;;  %v613_v29 = vrot.slane %v612_v19, 1 }
  0x9d   : >> { %v592_v31 = vrot.slane %v591_v28, 1  ;;  %v614_v32 = vmax.f32 %v612_v19, %v613_v29 }
  0x9f   : >> { %v593_v34 = vadd.f32 %v592_v31, %v591_v28  ;;  %v622_v35 = vmax.f32 %v621_v30, %v614_v32  ;;  %527 = sbr.rel (!%p524_p11) target bundleno = 123 (0x7b), region = 133 }
  0xa1   : >> { %v618_v36 = vadd.f32 %v617_v33, %v593_v34  ;;  %623 = vst [vmem:[%s620_s26] sm:$0x1] %v622_v35 }
  0xa3   : >> { %619 = vst [vmem:[%s616_s13] sm:$0x1] %v618_v36 }
  0xa4 PF: > { %p1134_p12 = scmp.ne.s32.totalorder %s1528_s21, 3 }
  0xa5   : > { %s2176_s15 = sld [smem:[#allocation24_spill]] (!%p1134_p12) }
  0xa6   : > { %627 = sbr.rel (%p1134_p12) target bundleno = 1335 (0x537), region = 87  ;;  %s2177_s14 = sld [smem:[#allocation25_spill]] (!%p1134_p12) }
  0xa7   : > { %s2178_s1 = sld [smem:[#allocation26_spill]] (!%p1134_p12) }
  0xab   : > { %v632_v37 = vld [vmem:[%s1780_s0] sm:$0xff]  ;;  %v1558_v38 = vmov 0   ;;  %v663_v41 = vsub.s32 2, %v1803_v11  ;;  %v629_v7 = vld [vmem:[#allocation3] sm:$0xff]  ;;  %v643_v8 = vsub.s32 0, %v1803_v11  ;;  %v653_v23 = vsub.s32 1, %v1803_v11 }
  0xac   : > { %1329 = vset.pattern.permute.xlu0 %v1558_v38  ;;  %v639_v39 = vld [vmem:[%s2120_s5] sm:$0x7]  ;;  %vm630_vm8 = vcmp.eq.f32.partialorder %v629_v7, -inf  ;;  %v1330_v11 = vld [vmem:[%s2124_s9 + $0x38] sm:$0xff]   ;;  %v1331_v57 = vld [vmem:[%s2124_s9 + $0x30] sm:$0xff]   ;;  %vm890_vm9 = vcmask 523264  }
  0xad   : > { %v640_v40 = vld [vmem:[%s2121_s6] sm:$0x7]  ;;  %635 = vperm.xlu0 %1329, %v632_v37   ;;  %v664_v2 = vrot.slane %v639_v39, %v663_v41  ;;  %v644_v9 = vrot.slane %v639_v39, %v643_v8  ;;  %v631_v10 = vsel %vm630_vm8, 0.0, %v629_v7  ;;  %v654_v24 = vrot.slane %v639_v39, %v653_v23  ;;  %1175 = vmatprep.subr.bf16.mxu0 %v1330_v11  ;;  %v1332_v58 = vld [vmem:[%s2124_s9 + $0x28] sm:$0xff]   ;;  %v1334_v60 = vld [vmem:[%s2124_s9 + $0x18] sm:$0xff]  }
  0xae   : > { %v628_v42 = vld [vmem:[#allocation2] sm:$0xff]  ;;  %v669_v3 = vrot.slane %v640_v40, %v663_v41  ;;  %v649_v21 = vrot.slane %v640_v40, %v643_v8  ;;  %v659_v27 = vrot.slane %v640_v40, %v653_v23  ;;  %1176 = vmatpush3.bf16.msra.mxu0 %v1330_v11  ;;  %v1335_v61 = vld [vmem:[%s2124_s9 + $0x10] sm:$0xff]   ;;  %v1336_v62 = vld [vmem:[%s2124_s9 + $0x8] sm:$0xff]  }
  0xaf   : > { %v665_v4 = vmul.f32 %v664_v2, %v628_v42  ;;  %v645_v20 = vmul.f32 %v644_v9, %v631_v10  ;;  %1177 = vmatprep.subr.bf16.mxu0 %v1331_v57  ;;  %v1333_v59 = vld [vmem:[%s2124_s9 + $0x20] sm:$0xff]   ;;  %v1338_v0 = vld [vmem:[%s2126_s11 + $0x18] sm:$0xff]   ;;  %v1339_v2 = vld [vmem:[%s2126_s11 + $0x10] sm:$0xff]  }
  0xb0   : > { %v1337_v63 = vld [vmem:[%s2124_s9] sm:$0xff]   ;;  %1195 = vmatprep.subr.bf16.mxu1 %v1338_v0 }
  0xb1   : > { %v1972_v6 = vadd.f32 %v669_v3, %v665_v4  ;;  %v1975_v22 = vadd.f32 %v649_v21, %v645_v20  ;;  %1196 = vmatpush3.bf16.msra.mxu1 %v1338_v0  ;;  %v1135_v29 = vld [vmem:[%s2122_s7] ss:$0 sm:$0xff]  ;;  %v1340_v3 = vld [vmem:[%s2126_s11 + $0x8] sm:$0xff]  }
  0xb2   : > { %1178 = vmatpush3.bf16.msra.mxu0 %v1331_v57  ;;  %v1136_v33 = vld [vmem:[%s2123_s8] ss:$0 sm:$0xff]  ;;  %1197 = vmatprep.subr.bf16.mxu1 %v1339_v2 }
  0xb3   : > { %1179 = vmatprep.subr.bf16.mxu0 %v1332_v58  ;;  %v1341_v4 = vld [vmem:[%s2126_s11] sm:$0xff]  }
  0xb4   : > { %v1137_v8 = vld [vmem:[%s2125_s10] ss:$0 sm:$0xff] }
  0xb5   : > { %1198 = vmatpush3.bf16.msra.mxu1 %v1339_v2 }
  0xb6   : > { %1180 = vmatpush3.bf16.msra.mxu0 %v1332_v58  ;;  %1199 = vmatprep.subr.bf16.mxu1 %v1340_v3 }
  0xb7   : > { %1181 = vmatprep.subr.bf16.mxu0 %v1333_v59 }
  0xb9   : > { %1200 = vmatpush3.bf16.msra.mxu1 %v1340_v3 }
  0xba   : > { %1182 = vmatpush3.bf16.msra.mxu0 %v1333_v59  ;;  %1201 = vmatprep.subr.bf16.mxu1 %v1341_v4 }
  0xbb   : > { %1183 = vmatprep.subr.bf16.mxu0 %v1334_v60 }
  0xbd   : > { %1202 = vmatpush3.bf16.msra.mxu1 %v1341_v4 }
  0xbe   : > { %1184 = vmatpush3.bf16.msra.mxu0 %v1334_v60 }
  0xbf   : > { %1185 = vmatprep.subr.bf16.mxu0 %v1335_v61 }
  0xc2   : > { %1186 = vmatpush3.bf16.msra.mxu0 %v1335_v61 }
  0xc3   : > { %1187 = vmatprep.subr.bf16.mxu0 %v1336_v62 }
  0xc6   : > { %1188 = vmatpush3.bf16.msra.mxu0 %v1336_v62 }
  0xc7   : > { %1189 = vmatprep.subr.bf16.mxu0 %v1337_v63 }
  0xca   : > { %1190 = vmatpush3.bf16.msra.mxu0 %v1337_v63 }
  0xcc   : > { %673 = vadd.xlane.f32.xlu0 %v1975_v22 }
 0x128   : > { %v636_v25 = vpop.permute.xlu0 %635 }
 0x129   : > { %v638_v26 = vmul.f32 %v636_v25, %v628_v42 }
 0x12b   : > { %v655_v43 = vmul.f32 %v654_v24, %v638_v26 }
 0x12d   : > { %v1979_v44 = vadd.f32 %v659_v27, %v655_v43 }
 0x12f   : > { %675 = vadd.xlane.f32.xlu1 %v1979_v44 }
 0x133   : > { %677 = vadd.xlane.f32.xlu1 %v1972_v6 }
 0x155   : > { %v674_v45 = vpop.xlane.xlu0 %673 }
 0x156   : > { %v680_v46 = vmul.f32 0.0078125, %v674_v45 }
 0x158   : > { %v683_v47 = vsub.f32 %v1975_v22, %v680_v46 }
 0x15a   : > { %v686_v48 = vmul.f32 %v683_v47, %v683_v47 }
 0x15c   : > { %689 = vadd.xlane.f32.xlu1 %v686_v48 }
 0x1b8   : > { %v676_v49 = vpop.xlane.xlu1 %675 }
 0x1b9   : > { %v681_v50 = vmul.f32 0.0078125, %v676_v49 }
 0x1bb   : > { %v684_v51 = vsub.f32 %v1979_v44, %v681_v50 }
 0x1bc   : > { %v678_v52 = vpop.xlane.xlu1 %677 }
 0x1bd   : > { %v682_v53 = vmul.f32 0.0078125, %v678_v52  ;;  %v687_v54 = vmul.f32 %v684_v51, %v684_v51 }
 0x1bf   : > { %v685_v55 = vsub.f32 %v1972_v6, %v682_v53  ;;  %691 = vadd.xlane.f32.xlu1 %v687_v54 }
 0x1c1   : > { %v688_v56 = vmul.f32 %v685_v55, %v685_v55 }
 0x1c3   : > { %693 = vadd.xlane.f32.xlu1 %v688_v56 }
 0x1e5   : > { %v690_v1 = vpop.xlane.xlu1 %689 }
 0x1e6   : > { %v695_v5 = vmul.f32 0.0078125, %v690_v1 }
 0x1e8   : > { %v698_v12 = vadd.f32 1e-05, %v695_v5 }
 0x1ea   : > { %1342 = vrsqrt.f32 %v698_v12 }
 0x1f7   : > { %v1343_v19 = vpop.eup %1342 }
 0x1f8   : > { %v704_v28 = vmul.f32 %v1343_v19, %v683_v47  ;;  %v1146_v47 = vld [vmem:[%s2176_s15] ss:$0 sm:$0xff] }
 0x1fa   : > { %v713_v32 = vmul.f32 %v1135_v29, %v704_v28  ;;  %v1153_v28 = vld [vmem:[%s2177_s14] ss:$0 sm:$0xff] }
 0x1fc   : > { %v722_v36 = vadd.f32 %v1136_v33, %v713_v32 }
 0x248   : > { %v692_v13 = vpop.xlane.xlu1 %691 }
 0x249   : > { %v696_v14 = vmul.f32 0.0078125, %v692_v13 }
 0x24b   : > { %v699_v15 = vadd.f32 1e-05, %v696_v14 }
 0x24c   : > { %v694_v16 = vpop.xlane.xlu1 %693 }
 0x24d   : > { %1344 = vrsqrt.f32 %v699_v15  ;;  %v697_v17 = vmul.f32 0.0078125, %v694_v16 }
 0x24f   : > { %v700_v18 = vadd.f32 1e-05, %v697_v17 }
 0x251   : > { %1346 = vrsqrt.f32 %v700_v18 }
 0x25a   : > { %v1345_v30 = vpop.eup %1344 }
 0x25b   : > { %v705_v31 = vmul.f32 %v1345_v30, %v684_v51  ;;  %v1154_v30 = vld [vmem:[%s2178_s1] ss:$0 sm:$0xff] }
 0x25d   : > { %v714_v34 = vmul.f32 %v1135_v29, %v705_v31 }
 0x25e   : > { %v1347_v35 = vpop.eup %1346 }
 0x25f   : > { %v723_v37 = vadd.f32 %v1136_v33, %v714_v34  ;;  %v706_v38 = vmul.f32 %v1347_v35, %v685_v55 }
 0x261   : > { %v725_v39 = vpack.c.bf16 %v723_v37, %v722_v36  ;;  %v715_v40 = vmul.f32 %v1135_v29, %v706_v38 }
 0x263   : > { %1191 = vmatprep.mubr.bf16.mxu0 %v725_v39  ;;  %v724_v41 = vadd.f32 %v1136_v33, %v715_v40 }
 0x265   : > { %v726_v42 = vpack.c.bf16 %v724_v41, %v724_v41 }
 0x267   : > { %1192 = vmatmul.mubr.bf16.vlgmr.msra.gmra.mxu0 %v726_v42 }
 0x327   : > { %v1193_v7 = vpop.f32.mrf.mxu0 }
 0x328   : > { %v841_v10 = vadd.f32 %v1193_v7, %v1137_v8 }
 0x329   : > { %v832_v9 = vpop.f32.mrf.mxu0 }
 0x32a   : > { %v833_v21 = vadd.f32 %v1137_v8, %v832_v9  ;;  %v848_v25 = vmax.f32 %v841_v10, 0.0 }
 0x32b   : > { %v1194_v20 = vpop.f32.mrf.mxu0 }
 0x32c   : > { %v846_v26 = vmax.f32 %v833_v21, 0.0  ;;  %v850_v45 = vpack.c.bf16 %v848_v25, %v848_v25 }
 0x32d   : > { %v835_v23 = vpop.f32.mrf.mxu0 }
 0x32e   : > { %v836_v24 = vadd.f32 %v1137_v8, %v835_v23 }
 0x330   : > { %v847_v27 = vmax.f32 %v836_v24, 0.0 }
 0x332   : > { %v849_v43 = vpack.c.bf16 %v847_v27, %v846_v26 }
 0x334   : > { %1203 = vmatprep.mubr.msk.bf16.mxu1 %vm890_vm9, %v849_v43 }
 0x335   : > { %1204 = vmatmul.mubr.msk.bf16.vlgmr.msra.gmra.mxu1 %vm890_vm9, %v850_v45 }
 0x3f5   : > { %v1205_v46 = vpop.f32.mrf.mxu1 }
 0x3f6   : > { %v940_v53 = vadd.f32 %v1205_v46, %v1146_v47 }
 0x3f7   : > { %v931_v48 = vpop.f32.mrf.mxu1 }
 0x3f8   : > { %v932_v11 = vadd.f32 %v1146_v47, %v931_v48  ;;  %v947_v55 = vadd.f32 %v940_v53, %v1972_v6 }
 0x3f9   : > { %v1206_v49 = vpop.f32.mrf.mxu1 }
 0x3fa   : > { %v945_v50 = vadd.f32 %v932_v11, %v1975_v22 }
 0x3fb   : > { %v934_v51 = vpop.f32.mrf.mxu1 }
 0x3fc   : > { %v935_v52 = vadd.f32 %v1146_v47, %v934_v51  ;;  %950 = vadd.xlane.f32.xlu1 %v945_v50 }
 0x3fe   : > { %v946_v54 = vadd.f32 %v935_v52, %v1979_v44 }
 0x400   : > { %952 = vadd.xlane.f32.xlu1 %v946_v54 }
 0x404   : > { %954 = vadd.xlane.f32.xlu1 %v947_v55 }
 0x485   : > { %v951_v56 = vpop.xlane.xlu1 %950 }
 0x486   : > { %v956_v57 = vmul.f32 0.0078125, %v951_v56 }
 0x488   : > { %v959_v58 = vsub.f32 %v945_v50, %v956_v57 }
 0x489   : > { %v953_v59 = vpop.xlane.xlu1 %952 }
 0x48a   : > { %v957_v60 = vmul.f32 0.0078125, %v953_v59  ;;  %v962_v61 = vmul.f32 %v959_v58, %v959_v58 }
 0x48c   : > { %v960_v62 = vsub.f32 %v946_v54, %v957_v60  ;;  %965 = vadd.xlane.f32.xlu1 %v962_v61 }
 0x48d   : > { %v955_v63 = vpop.xlane.xlu1 %954 }
 0x48e   : > { %v958_v22 = vmul.f32 0.0078125, %v955_v63  ;;  %v963_v0 = vmul.f32 %v960_v62, %v960_v62 }
 0x490   : > { %v961_v1 = vsub.f32 %v947_v55, %v958_v22  ;;  %967 = vadd.xlane.f32.xlu0 %v963_v0 }
 0x492   : > { %v964_v5 = vmul.f32 %v961_v1, %v961_v1 }
 0x494   : > { %969 = vadd.xlane.f32.xlu1 %v964_v5 }
 0x515   : > { %v966_v44 = vpop.xlane.xlu1 %965 }
 0x516   : > { %v971_v12 = vmul.f32 0.0078125, %v966_v44 }
 0x518   : > { %v974_v13 = vadd.f32 1e-05, %v971_v12 }
 0x519   : > { %v968_v6 = vpop.xlane.xlu0 %967 }
 0x51a   : > { %1348 = vrsqrt.f32 %v974_v13  ;;  %v972_v14 = vmul.f32 0.0078125, %v968_v6 }
 0x51c   : > { %v975_v15 = vadd.f32 1e-05, %v972_v14 }
 0x51d   : > { %v970_v16 = vpop.xlane.xlu1 %969 }
 0x51e   : > { %1350 = vrsqrt.f32 %v975_v15  ;;  %v973_v17 = vmul.f32 0.0078125, %v970_v16 }
 0x520   : > { %v976_v18 = vadd.f32 1e-05, %v973_v17 }
 0x522   : > { %1352 = vrsqrt.f32 %v976_v18 }
 0x527   : > { %v1349_v19 = vpop.eup %1348 }
 0x528   : > { %v980_v29 = vmul.f32 %v1349_v19, %v959_v58 }
 0x52a   : > { %v989_v31 = vmul.f32 %v1153_v28, %v980_v29 }
 0x52b   : > { %v1351_v32 = vpop.eup %1350 }
 0x52c   : > { %v998_v33 = vadd.f32 %v1154_v30, %v989_v31  ;;  %v981_v34 = vmul.f32 %v1351_v32, %v960_v62 }
 0x52e   : > { %1001 = vst [vmem:[%s1782_s12] sm:$0xff] %v998_v33  ;;  %v990_v35 = vmul.f32 %v1153_v28, %v981_v34 }
 0x52f   : > { %v1353_v36 = vpop.eup %1352 }
 0x530   : > { %v999_v37 = vadd.f32 %v1154_v30, %v990_v35  ;;  %v982_v38 = vmul.f32 %v1353_v36, %v961_v1 }
 0x532   : > { %1002 = vst [vmem:[%s1782_s12 + $0x8] sm:$0xff] %v999_v37  ;;  %v991_v39 = vmul.f32 %v1153_v28, %v982_v38 }
 0x534   : > { %v1000_v40 = vadd.f32 %v1154_v30, %v991_v39 }
 0x536   : > { %1003 = vst [vmem:[%s1782_s12 + $0x10] sm:$0xff] %v1000_v40 }
 0x537 PF: > { %s1208_s24 = smul.u32 384, %s1532_s22  ;;  %s1018_s30 = sshll.u32 %s1782_s12, 4  ;;  %s2053_s30 = int_to_ptr.vmem [resolvable:$true] %s1018_s30 }
 0x538   : > { %s2179_s0 = sld [smem:[#allocation27_spill]]  ;;  %s2057_s23 = scalar_lea.sflag [#allocation10], %s471_s17 }
 0x539   : > { %s1418_s15 = scalar_lea.vmem %s2053_s30, 384  ;;  %s1559_s22 = smov [#allocation11]  }
 0x53a   : > { %p1419_p0 = scmp.ne.s32.totalorder %s2053_s30, %s1418_s15  ;;  %s1422_s12 = sshll.u32 %s1559_s22, 4  ;;  %s1423_s12 = int_to_ptr.vmem [resolvable:$false] %s1422_s12 }
 0x53b   : > { %s1424_s29 = scalar_lea.vmem %s1423_s12, 768  ;;  %p1425_p2 = scmp.lt.s32.totalorder %s2053_s30, %s1423_s12 }
 0x53c   : > { %p1420_p4 = pnand %p1419_p0, %p1739_p13  ;;  %p1426_p6 = scmp.lt.s32.totalorder %s1424_s29, %s1418_s15 }
 0x53e   : > { %s2051_s27 = scalar_lea.hbm %s2179_s0, %s1208_s24  ;;  %p1421_p1 = pneg %p1420_p4 }
 0x53f   : > { %p1427_p5 = por %p1426_p6, %p1425_p2 }
 0x541   : > { %p1428_p7 = pnand %p1427_p5, %p1421_p1 }
 0x543   : > { %1431 = shalt.err (!%p1428_p7)
}
 0x544   : > { %s1432_s17 = scalar_lea.hbm %s2051_s27, 384  ;;  %s1436_s26 = scalar_lea.hbm %s2179_s0, 768 }
 0x545   : > { %p1433_p9 = scmp.ne.s32.totalorder %s2051_s27, %s1432_s17  ;;  %p1437_p11 = scmp.lt.s32.totalorder %s2051_s27, %s2179_s0 }
 0x546   : > { %p1438_p12 = scmp.lt.s32.totalorder %s1436_s26, %s1432_s17 }
 0x547   : > { %p1434_p8 = pnand %p1433_p9, %p1739_p13 }
 0x548   : > { %p1439_p0 = por %p1438_p12, %p1437_p11 }
 0x549   : > { %p1435_p10 = pneg %p1434_p8 }
 0x54b   : > { %p1440_p4 = pnand %p1439_p0, %p1435_p10 }
 0x54d   : > { %1443 = shalt.err (!%p1440_p4)
}
 0x54e   : > { %s1560_s24 = smov 128   ;;  %s1561_s20 = smov 8  }
 0x54f   : > { %1211 = dma.vmem_to_hbm [thread:$0]  (%p1739_p13), %s2053_s30, 384, %s2051_s27, %s2057_s23, %s1560_s24, %s1560_s24, %s1561_s20  }
 0x550 PF: > { %p1222_p1 = scmp.ge.s32.totalorder %s1544_s25, 2  ;;  %s1033_s15 = sand.u32 1, %s1504_s16  }
 0x551   : > { %s1034_s22 = scalar_lea.sflag [#allocation10], %s1033_s15 }
 0x552   : > { %p1218_p2 = pnand %p1222_p1, %p1747_p3 }
 0x554   : > { %p1219_p6 = pneg %p1218_p2 }
 0x556   : > { %1499 = dma.done.wait (%p1219_p6), %s1034_s22, 384  }
 0x557   : > { %1501 = vsyncadd (%p1219_p6), %s1034_s22, 4294966912  ;;  %s45_s25 = sadd.s32 1, %s1544_s25   ;;  %s2181_s12 = sld [smem:[#allocation15_spill]] }
 0x558   : > { %p42_p5 = scmp.ge.s32.totalorder %s45_s25, 10   ;;  %s2182_s17 = sld [smem:[#allocation22_spill]] }
 0x559   : > { %s2183_s30 = sld [smem:[#allocation16_spill]]  ;;  %s2189_s16 = smov %s1508_s2 }
 0x55a   : > { %s2184_s20 = sld [smem:[#allocation21_spill]]  ;;  %s2191_s18 = smov %s1520_s19 }
 0x55b   : > { %s2185_s21 = sld [smem:[#allocation17_spill]]  ;;  %44 = sbr.rel (!%p42_p5) target bundleno = 46 (0x2e), region = 144 }
 0x55c   : > { %s2186_s22 = sld [smem:[#allocation18_spill]] }
 0x55d   : > { %s2187_s23 = sld [smem:[#allocation19_spill]]  ;;  %s2190_s2 = smov %s2181_s12 }
 0x55e   : > { %s2188_s24 = sld [smem:[#allocation20_spill]] }
 0x55f   : > { %s2192_s19 = smov %s2183_s30 }
 0x560   :  { %1039 = vsyncpa [#allocation9], 1 }
 0x561   :  { %1041 = vsyncpa [#allocation9 + $0x1], 1 }
 0x562   :  { %1042 = vsyncpa [#allocation10], 1 }
 0x563   :  { %1044 = vsyncpa [#allocation10 + $0x1], 1 }

</bundles_post_ra>
